<compile_context>
chip_gen: v7x
topology: tpu7x:2x2x1
jax: 0.10.0
libtpu: 0.0.40
codegen_flags: <defaults>
</compile_context>

<pallas_src>
import functools

import numpy as np
import jax
import jax.numpy as jnp
from jax import lax
from jax.experimental import pallas as pl
from jax.experimental.pallas import tpu as pltpu

_EPS_DICE = 1e-6            # DiceLoss(eps=1e-6) default
_LANES = 128                # lane width of the fused output / one-hot RHS
_K_MAX = _LANES - 1         # lanes 0.._K_MAX-1: gt instances; lane _K_MAX: dense sums
_CHUNK_MAX = 4096           # pixels per MXU contraction (one-hot <= 2 MiB f32)


def _round_up(x, m):
    return ((x + m - 1) // m) * m


def _vmem_capacity_bytes():
    """Generation-aware VMEM capacity (64 MiB/TC on v7x, 128 MiB on v5e/v6e)."""
    try:
        return int(pltpu.get_tpu_info().vmem_capacity_bytes)
    except Exception:
        return 64 * 1024 * 1024     # conservative fallback (v7x per-core)


# ---------------------------------------------------------------------------
# Fused kernel: per-image partial sums for both dense and per-instance dice.
#
#   out[b, q, k]  (q = 0..4, k = 0.._K_MAX-1): sum over pixels of image b whose
#                 gt-instance label is k+1 of
#                   q=0: p_main*gt*mask   q=1: p_main*mask
#                   q=2: p_thr *gt*mask   q=3: p_thr *mask   q=4: gt*mask
#   out[b, q, _K_MAX]: same sums over ALL pixels (whole-image DiceLoss terms).
#   Rows q = 5..7 are MXU padding and always zero.
# ---------------------------------------------------------------------------
def _fused_kernel(pm_ref, pt_ref, g_ref, m_ref, lab_ref, out_ref, lhs_buf, *,
                  g_chunks, rows, ragged):
    i = pl.program_id(1)
    chunk = pm_ref.shape[1]

    @pl.when(i == 0)
    def _():
        out_ref[...] = jnp.zeros_like(out_ref)

    # Zero the MXU-padding LHS rows once per grid step; rows 0..4 are rewritten
    # for every pixel chunk below.
    lhs_buf[5:8, :] = jnp.zeros((3, chunk), jnp.float32)

    lane1 = lax.broadcasted_iota(jnp.int32, (1, 1, _LANES), 2) + 1      # 1..128
    dense3 = lane1 == _LANES                                            # lane _K_MAX
    dense_row = (lax.broadcasted_iota(jnp.int32, (1, _LANES), 1)
                 == _K_MAX).astype(jnp.float32)                         # (1, L)

    @pl.loop(0, rows)
    def _(s):
        def chunk_body():
            pm = pm_ref[pl.ds(s, 1), :].astype(jnp.float32)             # (1, C)
            pt = pt_ref[pl.ds(s, 1), :].astype(jnp.float32)
            g = g_ref[pl.ds(s, 1), :].astype(jnp.float32)
            m = m_ref[pl.ds(s, 1), :].astype(jnp.float32)
            lab = lab_ref[pl.ds(s, 1), :]                               # (1, C) i32
            gm = g * m

            # Stack the 5 dice products into the (8, C) MXU LHS via a VMEM
            # scratch (static single-sublane stores; no risky reshapes).
            lhs_buf[0:1, :] = pm * gm
            lhs_buf[1:2, :] = pm * m
            lhs_buf[2:3, :] = pt * gm
            lhs_buf[3:4, :] = pt * m
            lhs_buf[4:5, :] = gm
            lhs = lhs_buf[...]                                          # (8, C)

            has_inst = jnp.max(lab) > 0

            @pl.when(has_inst)
            def _():
                # One-hot over the instance lane axis; lane _K_MAX is all-ones
                # so the whole-image dice sums fall out of the same MXU push.
                oh = jnp.logical_or(lab[:, :, None] == lane1,
                                    dense3).astype(jnp.float32)         # (1, C, L)
                rhs = oh.reshape(chunk, _LANES)                         # (C, L)
                out_ref[0, :, :] += jnp.dot(
                    lhs, rhs, preferred_element_type=jnp.float32)

            @pl.when(jnp.logical_not(has_inst))
            def _():
                # Background chunk (sparse-gt fast path): only the dense lane
                # receives contributions; skip one-hot + matmul entirely.
                out_ref[0, :, :] += (jnp.sum(lhs, axis=1, keepdims=True)
                                     * dense_row)

        if ragged:
            # Chunks past the flattened-pixel extent of this image are garbage
            # from the partial last block: skip them (their labels too).
            @pl.when(i * rows + s < g_chunks)
            def _():
                chunk_body()
        else:
            chunk_body()


def _fused_dice_sums(binary, thresh_binary, gt, mask, labels):
    """Single Pallas pass -> (N, 8, 128) dense + per-instance dice partial sums."""
    n = binary.shape[0]
    p = int(np.prod(binary.shape[1:]))
    chunk = max(128, min(_CHUNK_MAX, _round_up(p, 128)))
    p_pad = _round_up(p, chunk)
    g_chunks = p_pad // chunk

    def prep(x):
        x = x.reshape(n, -1)
        if p_pad != p:
            # Padded pixels carry gt/mask/label == 0 so they contribute nothing.
            x = jnp.pad(x, ((0, 0), (0, p_pad - p)))
        return x.reshape(n, g_chunks, chunk)

    # TODO(synk): gt/mask/labels could be streamed as bf16/int16 to cut HBM
    # bytes further; kept at caller dtype / int32 for exact parity.
    ins = [prep(binary), prep(thresh_binary), prep(gt), prep(mask), prep(labels)]

    cap = _vmem_capacity_bytes()
    blk_bytes = max(8 * chunk * 4, cap // 40)       # per-input DMA block (f32)
    r_budget = max(8, (blk_bytes // (chunk * 4)) // 8 * 8)
    rows = g_chunks if g_chunks <= 8 else min(r_budget, (g_chunks // 8) * 8)
    grid = (n, pl.cdiv(g_chunks, rows))
    ragged = (g_chunks % rows) != 0

    spec = pl.BlockSpec((None, rows, chunk), lambda b, i: (b, i, 0))
    kernel = functools.partial(_fused_kernel, g_chunks=g_chunks, rows=rows,
                               ragged=ragged)
    return pl.pallas_call(
        kernel,
        out_shape=jax.ShapeDtypeStruct((n, 8, _LANES), jnp.float32),
        grid=grid,
        in_specs=[spec] * 5,
        out_specs=pl.BlockSpec((1, 8, _LANES), lambda b, i: (b, 0, 0)),
        scratch_shapes=[pltpu.VMEM((8, chunk), jnp.float32)],
        compiler_params=pltpu.CompilerParams(
            dimension_semantics=("parallel", "arbitrary"),
            vmem_limit_bytes=cap // 2),
    )(*ins)


# ---------------------------------------------------------------------------
# Host-side post-processing of the fused partial sums.
# ---------------------------------------------------------------------------
def _dense_losses_from_sums(sums, eps=_EPS_DICE):
    tot = jnp.sum(sums[:, :, _K_MAX], axis=0)                   # (8,)
    main = 1.0 - 2.0 * tot[0] / (tot[1] + tot[4] + eps)
    thresh = 1.0 - 2.0 * tot[2] / (tot[3] + tot[4] + eps)
    return main, thresh


def _instance_losses_from_sums(sums, counts, eps=_EPS_DICE):
    # TODO(synk): the reference InstanceDiceLoss also labels predicted instances
    # and does IoU matching; only gt-instance-masked dice is reproduced here.
    n_with = sum(1 for c in counts if c > 0)
    if n_with == 0:
        # TODO(synk): host-side data-dependent branch; hoist if wrapping in jit.
        return jnp.float32(0.0), jnp.float32(0.0)
    inst = sums[:, :, :_K_MAX]
    dice_m = 1.0 - 2.0 * inst[:, 0] / (inst[:, 1] + inst[:, 4] + eps)
    dice_t = 1.0 - 2.0 * inst[:, 2] / (inst[:, 3] + inst[:, 4] + eps)
    valid = jnp.asarray(
        (np.arange(_K_MAX)[None, :] < np.asarray(counts)[:, None])
        .astype(np.float32))                                     # (N, K)
    main_inst = jnp.sum(jnp.sum(dice_m * valid, axis=1)) / n_with
    thresh_inst = jnp.sum(jnp.sum(dice_t * valid, axis=1)) / n_with
    return main_inst, thresh_inst


# ---------------------------------------------------------------------------
# Host-side connected components (4-connectivity).
# ---------------------------------------------------------------------------
def _label_components(binary_np):
    try:
        from scipy import ndimage
        lab, cnt = ndimage.label(binary_np)
        return lab.astype(np.int32), int(cnt)
    except Exception:
        pass
    h, w = binary_np.shape
    labels = np.zeros((h, w), np.int32)
    count = 0
    for r0 in range(h):
        for c0 in range(w):
            if binary_np[r0, c0] and labels[r0, c0] == 0:
                count += 1
                stack = [(r0, c0)]
                labels[r0, c0] = count
                while stack:
                    y, x = stack.pop()
                    for dy, dx in ((1, 0), (-1, 0), (0, 1), (0, -1)):
                        ny, nx = y + dy, x + dx
                        if (0 <= ny < h and 0 <= nx < w
                                and binary_np[ny, nx] and labels[ny, nx] == 0):
                            labels[ny, nx] = count
                            stack.append((ny, nx))
    return labels, count


def _prepare_instance_labels(gt, threshold):
    # TODO(synk): precompute gt instance labels in the input pipeline — this
    # device_get + host labeling forces a pipeline sync every training step.
    gt_np = np.asarray(jax.device_get(gt))
    n = gt_np.shape[0]
    labels = np.zeros(gt_np.shape, np.int32)
    counts = []
    for b in range(n):
        lab, cnt = _label_components(gt_np[b] > threshold)
        lab[lab > _K_MAX] = 0
        labels[b] = lab
        counts.append(min(cnt, _K_MAX))
    return labels, counts


# ---------------------------------------------------------------------------
# AdaptiveInstanceDiceLoss forward.
# ---------------------------------------------------------------------------
class AdaptiveInstanceDiceLossPallas:
    def __init__(self, iou_thresh=0.2, thresh=0.3):
        self.iou_thresh = iou_thresh
        self.thresh = thresh
        # nn.Parameter(torch.ones(1)) for each weight — deterministic init.
        self.weights = {
            "main": jnp.ones((1,), jnp.float32),
            "thresh": jnp.ones((1,), jnp.float32),
            "main_instance": jnp.ones((1,), jnp.float32),
            "thresh_instance": jnp.ones((1,), jnp.float32),
        }

    def partial_loss(self, weight, loss):
        return loss / weight + jnp.log(jnp.sqrt(weight))

    def forward(self, pred, batch):
        def squeeze_c(x):
            return x[:, 0] if x.ndim == 4 else x   # DiceLoss._compute: pred[:, 0]

        binary = squeeze_c(pred["binary"])
        thresh_binary = squeeze_c(pred["thresh_binary"])
        gt = squeeze_c(batch["gt"])
        mask = squeeze_c(batch["mask"])

        labels = batch.get("gt_instance_labels")
        counts = batch.get("gt_instance_counts")
        if labels is None or counts is None:
            labels, counts = _prepare_instance_labels(gt, self.thresh)
        counts = [min(int(c), _K_MAX) for c in np.asarray(counts).tolist()]
        labels = jnp.asarray(np.asarray(labels, np.int32))

        sums = _fused_dice_sums(binary, thresh_binary, gt, mask, labels)
        main_loss, thresh_loss = _dense_losses_from_sums(sums)
        main_instance_loss, thresh_instance_loss = _instance_losses_from_sums(
            sums, counts)

        loss = (self.partial_loss(self.weights["main"], main_loss)
                + self.partial_loss(self.weights["thresh"], thresh_loss)
                + self.partial_loss(self.weights["main_instance"],
                                    main_instance_loss)
                + self.partial_loss(self.weights["thresh_instance"],
                                    thresh_instance_loss))

        metrics = dict(main_loss=main_loss,
                       thresh_loss=thresh_loss,
                       main_instance_loss=main_instance_loss,
                       thresh_instance_loss=thresh_instance_loss)
        metrics.update(self.weights)
        return loss, metrics


# ---------------------------------------------------------------------------
# Pure-numpy float64 reference (self-check only).
# ---------------------------------------------------------------------------
def _reference_losses(binary, thresh_binary, gt, mask, labels_np, counts,
                      eps=_EPS_DICE):
    b = np.asarray(jax.device_get(binary), np.float64)
    t = np.asarray(jax.device_get(thresh_binary), np.float64)
    g = np.asarray(jax.device_get(gt), np.float64)
    m = np.asarray(jax.device_get(mask), np.float64)
    gm = g * m

    def dense(p):
        return 1.0 - 2.0 * (p * gm).sum() / ((p * m).sum() + gm.sum() + eps)

    def inst(p):
        tot, n_with = 0.0, 0
        for bi in range(b.shape[0]):
            if counts[bi] == 0:
                continue
            n_with += 1
            for k in range(1, counts[bi] + 1):
                sel = labels_np[bi] == k
                i_k = (p[bi] * gm[bi] * sel).sum()
                p_k = (p[bi] * m[bi] * sel).sum()
                g_k = (gm[bi] * sel).sum()
                tot += 1.0 - 2.0 * i_k / (p_k + g_k + eps)
        return tot / n_with if n_with else 0.0

    return dense(b), dense(t), inst(b), inst(t)


if __name__ == "__main__":
    key = jax.random.PRNGKey(0)
    k1, k2, k3 = jax.random.split(key, 3)

    N, H, W = 2, 16, 16
    binary = jax.nn.sigmoid(jax.random.normal(k1, (N, 1, H, W), jnp.float32))
    thresh_binary = jax.nn.sigmoid(jax.random.normal(k2, (N, 1, H, W), jnp.float32))

    # Ground truth with two separated rectangular instances per image.
    gt = jnp.zeros((N, 1, H, W), jnp.float32)
    gt = gt.at[:, :, 2:6, 2:6].set(1.0)
    gt = gt.at[:, :, 9:14, 8:13].set(1.0)

    mask = (jax.random.uniform(k3, (N, H, W)) > 0.1).astype(jnp.float32)

    module = AdaptiveInstanceDiceLossPallas()
    loss, metrics = module.forward(
        dict(binary=binary, thresh_binary=thresh_binary),
        dict(gt=gt, mask=mask),
    )
    jax.block_until_ready(loss)
    for v in metrics.values():
        jax.block_until_ready(v)

    # Numerical self-check against a float64 reference (loose rtol: the MXU may
    # use bf16 passes for the f32 contraction at default precision).
    labels_np, counts = _prepare_instance_labels(gt[:, 0], module.thresh)
    ref = _reference_losses(binary[:, 0], thresh_binary[:, 0], gt[:, 0], mask,
                            labels_np, counts)
    got = (float(metrics["main_loss"]), float(metrics["thresh_loss"]),
           float(metrics["main_instance_loss"]),
           float(metrics["thresh_instance_loss"]))
    np.testing.assert_allclose(got, ref, rtol=2e-2, atol=1e-3)

    print("KERNEL_OK")
</pallas_src>

<mosaic_0001>
module attributes {stable_mosaic.version = 11 : i64} {
  func.func @_fused_kernel(%arg0: i32, %arg1: i32, %arg2: memref<1x1x256xf32, #tpu.memory_space<vmem>>, %arg3: memref<1x1x256xf32, #tpu.memory_space<vmem>>, %arg4: memref<1x1x256xf32, #tpu.memory_space<vmem>>, %arg5: memref<1x1x256xf32, #tpu.memory_space<vmem>>, %arg6: memref<1x1x256xi32, #tpu.memory_space<vmem>>, %arg7: memref<1x8x128xf32, #tpu.memory_space<vmem>>, %arg8: memref<8x256xf32, #tpu.memory_space<vmem>>) attributes {dimension_semantics = [#tpu.dimension_semantics<parallel>, #tpu.dimension_semantics<arbitrary>], iteration_bounds = array<i64: 2, 1>, scalar_prefetch = 0 : i64, scratch_operands = 1 : i64, tpu.core_type = #tpu.core_type<tc>, window_params = [{transform_indices = @transform_0, window_bounds = array<i64: 1, 1, 256>}, {transform_indices = @transform_1, window_bounds = array<i64: 1, 1, 256>}, {transform_indices = @transform_2, window_bounds = array<i64: 1, 1, 256>}, {transform_indices = @transform_3, window_bounds = array<i64: 1, 1, 256>}, {transform_indices = @transform_4, window_bounds = array<i64: 1, 1, 256>}, {transform_indices = @transform_5, window_bounds = array<i64: 1, 8, 128>}]} {
    %c0_i32 = arith.constant 0 : i32
    %0 = arith.cmpi eq, %arg1, %c0_i32 : i32
    %1 = arith.extui %0 : i1 to i32
    %c0_i32_0 = arith.constant 0 : i32
    %2 = arith.cmpi ne, %1, %c0_i32_0 : i32
    scf.if %2 {
      %cst_27 = arith.constant 0.000000e+00 : f32
      %53 = vector.broadcast %cst_27 : f32 to vector<1x8x128xf32>
      %c0_28 = arith.constant 0 : index
      %c0_29 = arith.constant 0 : index
      %c0_30 = arith.constant 0 : index
      %54 = vector.load %arg7[%c0_28, %c0_29, %c0_30] : memref<1x8x128xf32, #tpu.memory_space<vmem>>, vector<1x8x128xf32>
      tpu.vector_store %arg7[%c0_28, %c0_29, %c0_30], %53 {strides = array<i32>} : memref<1x8x128xf32, #tpu.memory_space<vmem>>, vector<1x8x128xf32>,
    } else {
    }
    %cst = arith.constant 0.000000e+00 : f32
    %3 = vector.broadcast %cst : f32 to vector<3x256xf32>
    %c5 = arith.constant 5 : index
    %c0 = arith.constant 0 : index
    %4 = vector.load %arg8[%c5, %c0] : memref<8x256xf32, #tpu.memory_space<vmem>>, vector<3x256xf32>
    tpu.vector_store %arg8[%c5, %c0], %3 {strides = array<i32>} : memref<8x256xf32, #tpu.memory_space<vmem>>, vector<3x256xf32>,
    %5 = tpu.iota {dimensions = array<i32: 2>} : vector<1x1x128xi32>
    %c1_i32 = arith.constant 1 : i32
    %6 = vector.broadcast %c1_i32 : i32 to vector<1x1x128xi32>
    %7 = arith.addi %5, %6 : vector<1x1x128xi32>
    %c128_i32 = arith.constant 128 : i32
    %8 = vector.broadcast %c128_i32 : i32 to vector<1x1x128xi32>
    %9 = arith.cmpi eq, %7, %8 : vector<1x1x128xi32>
    %10 = tpu.iota {dimensions = array<i32: 1>} : vector<1x128xi32>
    %c127_i32 = arith.constant 127 : i32
    %11 = vector.broadcast %c127_i32 : i32 to vector<1x128xi32>
    %12 = arith.cmpi eq, %10, %11 : vector<1x128xi32>
    %13 = arith.extui %12 : vector<1x128xi1> to vector<1x128xi32>
    %14 = arith.sitofp %13 : vector<1x128xi32> to vector<1x128xf32>
    %c0_i32_1 = arith.constant 0 : i32
    %c1_i32_2 = arith.constant 1 : i32
    %15 = arith.muli %c0_i32_1, %c1_i32_2 : i32
    %c0_i32_3 = arith.constant 0 : i32
    %16 = arith.addi %c0_i32_3, %15 : i32
    %c0_4 = arith.constant 0 : index
    %17 = arith.index_cast %16 : i32 to index
    %c0_5 = arith.constant 0 : index
    %18 = vector.load %arg2[%c0_4, %17, %c0_5] : memref<1x1x256xf32, #tpu.memory_space<vmem>>, vector<1x1x256xf32>
    %19 = vector.shape_cast %18 : vector<1x1x256xf32> to vector<1x256xf32>
    %c0_6 = arith.constant 0 : index
    %20 = arith.index_cast %16 : i32 to index
    %c0_7 = arith.constant 0 : index
    %21 = vector.load %arg3[%c0_6, %20, %c0_7] : memref<1x1x256xf32, #tpu.memory_space<vmem>>, vector<1x1x256xf32>
    %22 = vector.shape_cast %21 : vector<1x1x256xf32> to vector<1x256xf32>
    %c0_8 = arith.constant 0 : index
    %23 = arith.index_cast %16 : i32 to index
    %c0_9 = arith.constant 0 : index
    %24 = vector.load %arg4[%c0_8, %23, %c0_9] : memref<1x1x256xf32, #tpu.memory_space<vmem>>, vector<1x1x256xf32>
    %25 = vector.shape_cast %24 : vector<1x1x256xf32> to vector<1x256xf32>
    %c0_10 = arith.constant 0 : index
    %26 = arith.index_cast %16 : i32 to index
    %c0_11 = arith.constant 0 : index
    %27 = vector.load %arg5[%c0_10, %26, %c0_11] : memref<1x1x256xf32, #tpu.memory_space<vmem>>, vector<1x1x256xf32>
    %28 = vector.shape_cast %27 : vector<1x1x256xf32> to vector<1x256xf32>
    %c0_12 = arith.constant 0 : index
    %29 = arith.index_cast %16 : i32 to index
    %c0_13 = arith.constant 0 : index
    %30 = vector.load %arg6[%c0_12, %29, %c0_13] : memref<1x1x256xi32, #tpu.memory_space<vmem>>, vector<1x1x256xi32>
    %31 = vector.shape_cast %30 : vector<1x1x256xi32> to vector<1x256xi32>
    %32 = arith.mulf %25, %28 : vector<1x256xf32>
    %33 = arith.mulf %19, %32 : vector<1x256xf32>
    %c0_14 = arith.constant 0 : index
    %c0_15 = arith.constant 0 : index
    %34 = vector.load %arg8[%c0_14, %c0_15] : memref<8x256xf32, #tpu.memory_space<vmem>>, vector<1x256xf32>
    tpu.vector_store %arg8[%c0_14, %c0_15], %33 {strides = array<i32>} : memref<8x256xf32, #tpu.memory_space<vmem>>, vector<1x256xf32>,
    %35 = arith.mulf %19, %28 : vector<1x256xf32>
    %c1 = arith.constant 1 : index
    %c0_16 = arith.constant 0 : index
    %36 = vector.load %arg8[%c1, %c0_16] : memref<8x256xf32, #tpu.memory_space<vmem>>, vector<1x256xf32>
    tpu.vector_store %arg8[%c1, %c0_16], %35 {strides = array<i32>} : memref<8x256xf32, #tpu.memory_space<vmem>>, vector<1x256xf32>,
    %37 = arith.mulf %22, %32 : vector<1x256xf32>
    %c2 = arith.constant 2 : index
    %c0_17 = arith.constant 0 : index
    %38 = vector.load %arg8[%c2, %c0_17] : memref<8x256xf32, #tpu.memory_space<vmem>>, vector<1x256xf32>
    tpu.vector_store %arg8[%c2, %c0_17], %37 {strides = array<i32>} : memref<8x256xf32, #tpu.memory_space<vmem>>, vector<1x256xf32>,
    %39 = arith.mulf %22, %28 : vector<1x256xf32>
    %c3 = arith.constant 3 : index
    %c0_18 = arith.constant 0 : index
    %40 = vector.load %arg8[%c3, %c0_18] : memref<8x256xf32, #tpu.memory_space<vmem>>, vector<1x256xf32>
    tpu.vector_store %arg8[%c3, %c0_18], %39 {strides = array<i32>} : memref<8x256xf32, #tpu.memory_space<vmem>>, vector<1x256xf32>,
    %c4 = arith.constant 4 : index
    %c0_19 = arith.constant 0 : index
    %41 = vector.load %arg8[%c4, %c0_19] : memref<8x256xf32, #tpu.memory_space<vmem>>, vector<1x256xf32>
    tpu.vector_store %arg8[%c4, %c0_19], %32 {strides = array<i32>} : memref<8x256xf32, #tpu.memory_space<vmem>>, vector<1x256xf32>,
    %c0_20 = arith.constant 0 : index
    %c0_21 = arith.constant 0 : index
    %42 = vector.load %arg8[%c0_20, %c0_21] : memref<8x256xf32, #tpu.memory_space<vmem>>, vector<8x256xf32>
    %43 = vector.shape_cast %31 : vector<1x256xi32> to vector<1x1x256xi32>
    %cst_22 = arith.constant dense<-2147483648> : vector<1xi32>
    %44 = vector.multi_reduction <maxsi>, %43, %cst_22 [1, 2] : vector<1x1x256xi32> to vector<1xi32>
    %45 = vector.shape_cast %44 : vector<1xi32> to vector<1x1x1xi32>
    %46 = vector.extract %45[0, 0, 0] : i32 from vector<1x1x1xi32>
    %c0_i32_23 = arith.constant 0 : i32
    %47 = arith.cmpi sgt, %46, %c0_i32_23 : i32
    %48 = arith.extui %47 : i1 to i32
    %c0_i32_24 = arith.constant 0 : i32
    %49 = arith.cmpi ne, %48, %c0_i32_24 : i32
    scf.if %49 {
      %53 = vector.shape_cast %31 : vector<1x256xi32> to vector<1x256x1xi32>
      %54 = vector.broadcast %53 : vector<1x256x1xi32> to vector<1x256x128xi32>
      %55 = vector.broadcast %7 : vector<1x1x128xi32> to vector<1x256x128xi32>
      %56 = arith.cmpi eq, %54, %55 : vector<1x256x128xi32>
      %57 = vector.broadcast %9 : vector<1x1x128xi1> to vector<1x256x128xi1>
      %58 = arith.ori %56, %57 : vector<1x256x128xi1>
      %59 = arith.extui %58 : vector<1x256x128xi1> to vector<1x256x128xi32>
      %60 = arith.sitofp %59 : vector<1x256x128xi32> to vector<1x256x128xf32>
      %61 = vector.shape_cast %60 : vector<1x256x128xf32> to vector<256x128xf32>
      %c0_27 = arith.constant 0 : index
      %c0_28 = arith.constant 0 : index
      %c0_29 = arith.constant 0 : index
      %62 = vector.load %arg7[%c0_27, %c0_28, %c0_29] : memref<1x8x128xf32, #tpu.memory_space<vmem>>, vector<1x8x128xf32>
      %63 = vector.shape_cast %62 : vector<1x8x128xf32> to vector<8x128xf32>
      %cst_30 = arith.constant dense<0.000000e+00> : vector<8x128xf32>
      %64 = tpu.matmul %42, %61, %cst_30 {dimension_numbers = #tpu.dot_dimension_numbers<[1], [0], [0], [1], [0, 0, 1, 1], [], []>} : vector<8x256xf32>, vector<256x128xf32>, vector<8x128xf32> -> vector<8x128xf32>
      %65 = arith.addf %63, %64 : vector<8x128xf32>
      %c0_31 = arith.constant 0 : index
      %c0_32 = arith.constant 0 : index
      %c0_33 = arith.constant 0 : index
      %66 = vector.load %arg7[%c0_31, %c0_32, %c0_33] : memref<1x8x128xf32, #tpu.memory_space<vmem>>, vector<1x8x128xf32>
      %67 = vector.shape_cast %66 : vector<1x8x128xf32> to vector<8x128xf32>
      %68 = vector.shape_cast %65 : vector<8x128xf32> to vector<1x8x128xf32>
      tpu.vector_store %arg7[%c0_31, %c0_32, %c0_33], %68 {strides = array<i32>} : memref<1x8x128xf32, #tpu.memory_space<vmem>>, vector<1x8x128xf32>,
    } else {
    }
    %true = arith.constant true
    %50 = arith.xori %47, %true : i1
    %51 = arith.extui %50 : i1 to i32
    %c0_i32_25 = arith.constant 0 : i32
    %52 = arith.cmpi ne, %51, %c0_i32_25 : i32
    scf.if %52 {
      %c0_27 = arith.constant 0 : index
      %c0_28 = arith.constant 0 : index
      %c0_29 = arith.constant 0 : index
      %53 = vector.load %arg7[%c0_27, %c0_28, %c0_29] : memref<1x8x128xf32, #tpu.memory_space<vmem>>, vector<1x8x128xf32>
      %54 = vector.shape_cast %53 : vector<1x8x128xf32> to vector<8x128xf32>
      %cst_30 = arith.constant dense<0.000000e+00> : vector<8xf32>
      %55 = vector.multi_reduction <add>, %42, %cst_30 [1] : vector<8x256xf32> to vector<8xf32>
      %56 = vector.shape_cast %55 : vector<8xf32> to vector<8x1xf32>
      %57 = vector.broadcast %56 : vector<8x1xf32> to vector<8x128xf32>
      %58 = vector.broadcast %14 : vector<1x128xf32> to vector<8x128xf32>
      %59 = arith.mulf %57, %58 : vector<8x128xf32>
      %60 = arith.addf %54, %59 : vector<8x128xf32>
      %c0_31 = arith.constant 0 : index
      %c0_32 = arith.constant 0 : index
      %c0_33 = arith.constant 0 : index
      %61 = vector.load %arg7[%c0_31, %c0_32, %c0_33] : memref<1x8x128xf32, #tpu.memory_space<vmem>>, vector<1x8x128xf32>
      %62 = vector.shape_cast %61 : vector<1x8x128xf32> to vector<8x128xf32>
      %63 = vector.shape_cast %60 : vector<8x128xf32> to vector<1x8x128xf32>
      tpu.vector_store %arg7[%c0_31, %c0_32, %c0_33], %63 {strides = array<i32>} : memref<1x8x128xf32, #tpu.memory_space<vmem>>, vector<1x8x128xf32>,
    } else {
    }
    %c1_i32_26 = arith.constant 1 : i32
    return
  }
  func.func @transform_0(%arg0: i32, %arg1: i32) -> (i32, i32, i32) {
    %c0_i32 = arith.constant 0 : i32
    %c0_i32_0 = arith.constant 0 : i32
    return %arg0, %arg1, %c0_i32 : i32, i32, i32
  }
  func.func @transform_1(%arg0: i32, %arg1: i32) -> (i32, i32, i32) {
    %c0_i32 = arith.constant 0 : i32
    %c0_i32_0 = arith.constant 0 : i32
    return %arg0, %arg1, %c0_i32 : i32, i32, i32
  }
  func.func @transform_2(%arg0: i32, %arg1: i32) -> (i32, i32, i32) {
    %c0_i32 = arith.constant 0 : i32
    %c0_i32_0 = arith.constant 0 : i32
    return %arg0, %arg1, %c0_i32 : i32, i32, i32
  }
  func.func @transform_3(%arg0: i32, %arg1: i32) -> (i32, i32, i32) {
    %c0_i32 = arith.constant 0 : i32
    %c0_i32_0 = arith.constant 0 : i32
    return %arg0, %arg1, %c0_i32 : i32, i32, i32
  }
  func.func @transform_4(%arg0: i32, %arg1: i32) -> (i32, i32, i32) {
    %c0_i32 = arith.constant 0 : i32
    %c0_i32_0 = arith.constant 0 : i32
    return %arg0, %arg1, %c0_i32 : i32, i32, i32
  }
  func.func @transform_5(%arg0: i32, %arg1: i32) -> (i32, i32, i32) {
    %c0_i32 = arith.constant 0 : i32
    %c0_i32_0 = arith.constant 0 : i32
    %c0_i32_1 = arith.constant 0 : i32
    return %arg0, %c0_i32, %c0_i32_0 : i32, i32, i32
  }
}

</mosaic_0001>

<bundles_post_ra>
// kernel: tpu_custom_call.1
= control target key start
LH: loop header
LB: loop body
LE: loop exit
PB: predicated region body
PF: predicated region fallthrough
CT: control target
= control target key end

     0   :  { %10 = vsyncpa [#allocation4], 0  ;;  %s1792_s0 = inlined_call_operand.hbm [shape: f32[2,1,256], index: 0, kind: input, shape index: {}]   ;;  %s1793_s1 = inlined_call_operand.hbm [shape: f32[2,1,256], index: 1, kind: input, shape index: {}]   ;;  %s1794_s2 = inlined_call_operand.vmem [shape: f32[2,1,256], index: 2, kind: input, shape index: {}]   ;;  %s1795_s3 = inlined_call_operand.vmem [shape: f32[2,1,256], index: 3, kind: input, shape index: {}]   ;;  %s1796_s4 = inlined_call_operand.vmem [shape: s32[2,1,256], index: 4, kind: input, shape index: {}]   ;;  %s1797_s5 = inlined_call_operand.hbm [shape: f32[2,8,128], index: 5, kind: output, shape index: {}]  }
   0x1   :  { %12 = vsyncpa [#allocation4 + $0x1], 0 }
   0x2   :  { %13 = vsyncpa [#allocation7], 0 }
   0x3   :  { %15 = vsyncpa [#allocation7 + $0x1], 0 }
   0x4   :  { %16 = vsyncpa [#allocation5], 0 }
   0x5   :  { %18 = vsyncpa [#allocation5 + $0x1], 0  ;;  %s1411_s18 = smov 0   ;;  %s1413_s19 = smov 0  }
   0x6   :  { %s1415_s20 = smov 0   ;;  %s1417_s21 = smov 0  }
   0x7   :  { %s1419_s22 = smov 0   ;;  %s1421_s23 = smov 0  }
   0x8 LB: > { %s1000_s24 = sadd.s32 4294967295, %s1374_s23   ;;  %s1001_s25 = sadd.s32 4294967294, %s1374_s23   ;;  %s1374_s23 = sphi %s1421_s23, %s24_s23   ;;  %s1370_s22 = sphi %s1419_s22, %s1819_s22   ;;  %s1366_s21 = sphi %s1417_s21, %s1818_s21   ;;  %s1362_s20 = sphi %s1415_s20, %s1817_s20   ;;  %s1358_s19 = sphi %s1413_s19, %s1816_s19   ;;  %s1354_s18 = sphi %s1411_s18, %s1815_s18  }
   0x9   : > { %s36_s26 = sadd.s32 1, %s1370_s22  ;;  %s45_s27 = sadd.s32 1, %s1362_s20 }
   0xa   : > { %p38_p0 = scmp.ge.s32.totalorder %s36_s26, 2  ;;  %p52_p1 = scmp.ne.s32.totalorder %s1362_s20, %s1358_s19 }
   0xb   : > { %p53_p2 = scmp.eq.s32.totalorder %s1374_s23, 0  ;;  %p58_p3 = scmp.ne.s32.totalorder %s1358_s19, %s1354_s18 }
   0xc   : > { %s1821_s26 = smov (%p38_p0, %s36_s26), 0  ;;  %p59_p5 = scmp.eq.s32.totalorder %s1000_s24, 0 }
   0xd   : > { %p1452_p4 = por %p53_p2, %p52_p1  ;;  %s40_s29 = ssub.s32 %s1370_s22, %s1821_s26 }
   0xe   : > { %p194_p6 = scmp.eq.s32.totalorder %s1000_s24, 1  ;;  %p43_p7 = scmp.eq.s32.totalorder %s40_s29, 0 }
   0xf   : > { %p1458_p8 = por %p59_p5, %p58_p3  ;;  %p200_p10 = scmp.eq.s32.totalorder %s1001_s25, 1 }
  0x10   : > { %p1462_p9 = por %p194_p6, %p52_p1  ;;  %p1176_p13 = scmp.lt.s32.totalorder %s1374_s23, 2 }
  0x11   : > { %s1801_s30 = scalar_select %p1458_p8, 1, 0 }
  0x12   : > { %s1802_s6 = scalar_select %p1462_p9, 1, 0 }
  0x13   : > { %s1467_s7 = scalar_select %p43_p7, %s1362_s20, %s45_s27  }
  0x14   : > { %p1469_p11 = por %p200_p10, %p58_p3  ;;  %s1476_s9 = sand.u32 1, %s1362_s20  }
  0x15   : > { %s1004_s10 = sshll.u32 %s1476_s9, 1  ;;  %s1088_s11 = sshll.u32 %s1370_s22, 5 }
  0x16   : > { %s1803_s8 = scalar_select %p1469_p11, 1, 0 }
  0x17   : > { %s1485_s14 = scalar_lea.hbm %s1792_s0, %s1088_s11  ;;  %s224_s15 = scalar_lea.vmem [#allocation3], %s1004_s10 }
  0x18   : > { %s234_s16 = sshll.u32 %s224_s15, 4  ;;  %p1493_p0 = pnand %p1176_p13, %p1452_p4  ;;  %s1489_s16 = int_to_ptr.vmem [resolvable:$true] %s234_s16 }
  0x19   : > { %s221_s24 = scalar_lea.sflag [#allocation4], %s1476_s9  ;;  %s1228_s25 = scalar_lea.hbm %s1485_s14, 32 }
  0x1a   : > { %p1229_p3 = scmp.ne.s32.totalorder %s1485_s14, %s1228_s25  ;;  %p1230_p5 = pneg %p1493_p0 }
  0x1b   : > { %s1233_s28 = scalar_lea.hbm %s1792_s0, 64  ;;  %p1234_p4 = scmp.lt.u32.totalorder %s1485_s14, %s1792_s0 }
  0x1c   : > { %p1231_p6 = pnand %p1230_p5, %p1229_p3  ;;  %p1235_p10 = scmp.lt.u32.totalorder %s1233_s28, %s1228_s25 }
  0x1d   : > { %p1237_p12 = scmp.lt.u32.totalorder %s1228_s25, %s1485_s14 }
  0x1e   : > { %p1232_p7 = pneg %p1231_p6  ;;  %p1236_p13 = por %p1235_p10, %p1234_p4 }
  0x20   : > { %p1238_p1 = por %p1237_p12, %p1236_p13 }
  0x22   : > { %p1239_p2 = pnand %p1238_p1, %p1232_p7 }
  0x24   : > { %1242 = shalt.err (!%p1239_p2)
}
  0x25   : > { %s1243_s15 = scalar_lea.vmem %s1489_s16, 32  ;;  %s1376_s27 = smov [#allocation3]  }
  0x26   : > { %p1244_p3 = scmp.ne.s32.totalorder %s1489_s16, %s1243_s15  ;;  %s1248_s29 = sshll.u32 %s1376_s27, 4  ;;  %s1249_s29 = int_to_ptr.vmem [resolvable:$false] %s1248_s29 }
  0x27   : > { %s1250_s12 = scalar_lea.vmem %s1249_s29, 64  ;;  %p1251_p9 = scmp.lt.s32.totalorder %s1489_s16, %s1249_s29 }
  0x28   : > { %p1246_p6 = pnand %p1244_p3, %p1230_p5  ;;  %p1252_p4 = scmp.lt.s32.totalorder %s1250_s12, %s1243_s15 }
  0x2a   : > { %p1247_p11 = pneg %p1246_p6  ;;  %p1253_p10 = por %p1252_p4, %p1251_p9 }
  0x2c   : > { %p1254_p12 = pnand %p1253_p10, %p1247_p11 }
  0x2e   : > { %1257 = shalt.err (!%p1254_p12)
}
  0x2f   : > { %1168 = dma.hbm_to_vmem [thread:$0]  (!%p1493_p0), %s1485_s14, 32, %s1489_s16, %s221_s24  }
  0x30   : > { %p1805_p1 = scmp.lt.s32.totalorder %s1374_s23, 3  ;;  %p1806_p2 = scmp.ge.s32.totalorder %s1374_s23, 1 }
  0x31   : > { %s1538_s15 = scalar_lea.hbm %s1793_s1, %s1088_s11  ;;  %s245_s27 = scalar_lea.vmem [#allocation6], %s1004_s10 }
  0x32   : > { %p1529_p7 = pnand %p1806_p2, %p1805_p1  ;;  %s255_s29 = sshll.u32 %s245_s27, 4  ;;  %s256_s29 = int_to_ptr.vmem [resolvable:$true] %s255_s29 }
  0x33   : > { %s242_s14 = scalar_lea.sflag [#allocation7], %s1476_s9  ;;  %s1258_s16 = scalar_lea.hbm %s1538_s15, 32 }
  0x34   : > { %s1807_s25 = scalar_select %p1529_p7, 1, 0 }
  0x35   : > { %p1259_p9 = scmp.ne.s32.totalorder %s1538_s15, %s1258_s16  ;;  %s1263_s11 = scalar_lea.hbm %s1793_s1, 64 }
  0x36   : > { %p1264_p3 = scmp.lt.u32.totalorder %s1538_s15, %s1793_s1  ;;  %p1265_p6 = scmp.lt.u32.totalorder %s1263_s11, %s1258_s16 }
  0x37   : > { %p1261_p11 = pnand %p1259_p9, %p1230_p5  ;;  %p1267_p10 = scmp.lt.u32.totalorder %s1258_s16, %s1538_s15 }
  0x38   : > { %p1266_p4 = por %p1265_p6, %p1264_p3 }
  0x39   : > { %p1262_p13 = pneg %p1261_p11 }
  0x3a   : > { %p1268_p12 = por %p1267_p10, %p1266_p4 }
  0x3c   : > { %p1269_p1 = pnand %p1268_p12, %p1262_p13 }
  0x3e   : > { %1272 = shalt.err (!%p1269_p1)
}
  0x3f   : > { %s1273_s9 = scalar_lea.vmem %s256_s29, 32  ;;  %s1377_s10 = smov [#allocation6]  }
  0x40   : > { %p1274_p2 = scmp.ne.s32.totalorder %s256_s29, %s1273_s9  ;;  %s1278_s27 = sshll.u32 %s1377_s10, 4  ;;  %s1279_s27 = int_to_ptr.vmem [resolvable:$false] %s1278_s27 }
  0x41   : > { %s1280_s24 = scalar_lea.vmem %s1279_s27, 64  ;;  %p1281_p8 = scmp.lt.s32.totalorder %s256_s29, %s1279_s27 }
  0x42   : > { %p1276_p9 = pnand %p1274_p2, %p1230_p5  ;;  %p1282_p7 = scmp.lt.s32.totalorder %s1280_s24, %s1273_s9 }
  0x44   : > { %p1277_p11 = pneg %p1276_p9  ;;  %p1283_p3 = por %p1282_p7, %p1281_p8 }
  0x46   : > { %p1284_p6 = pnand %p1283_p3, %p1277_p11 }
  0x48   : > { %1287 = shalt.err (!%p1284_p6)
}
  0x49   : > { %1171 = dma.hbm_to_vmem [thread:$0]  (!%p1493_p0), %s1538_s15, 32, %s256_s29, %s242_s14  }
  0x4a   : > { %p1808_p13 = scmp.ne.s32.totalorder %s1807_s25, 0 }
  0x4b   : > { %s1565_s16 = sand.u32 (!%p1808_p13), 1, %s1358_s19   ;;  %p1809_p8 = scmp.ne.s32.totalorder (!%p1808_p13), %s1801_s30, 0 }
  0x4c   : > { %297 = sbr.rel (%p1808_p13) target bundleno = 1033 (0x409), region = 40  ;;  %s1011_s12 = sshll.u32 (!%p1808_p13), %s1565_s16, 1 }
  0x4d   : > { %s300_s11 = scalar_lea.sflag (!%p1808_p13), [#allocation4], %s1565_s16  ;;  %s1569_s28 = scalar_lea.vmem (!%p1808_p13), [#allocation3], %s1011_s12 }
  0x53   : > { %1341 = dma.done.wait (%p1809_p8), %s300_s11, 32  }
  0x54   : > { %1343 = vsyncadd (%p1809_p8), %s300_s11, 4294967264  ;;  %s309_s17 = scalar_lea.sflag [#allocation7], %s1565_s16  ;;  %s312_s25 = scalar_lea.vmem [#allocation6], %s1011_s12 }
  0x55   : > { %1345 = dma.done.wait (%p1809_p8), %s309_s17, 32  }
  0x56   : > { %1347 = vsyncadd (%p1809_p8), %s309_s17, 4294967264  ;;  %s1013_s15 = sshll.u32 %s1565_s16, 3  ;;  %p368_p0 = scmp.lt.s32.totalorder %s1366_s21, 1  ;;  %v399_v0 = vlaneseq  ;;  %v1378_v1 = vmov 0.0   ;;  %vm444_vm2 = vcmask 1040384  }
  0x57   : > { %397 = vst [vmem:[#allocation2] sm:$0xe0] %v1378_v1  ;;  %398 = vst [vmem:[#allocation2 + $0x8] sm:$0xe0] %v1378_v1  ;;  %s1583_s14 = scalar_lea.vmem [#allocation8], %s1013_s15 }
  0x58   : > { %s369_s29 = scalar_select %p368_p0, %s1366_s21, 1  ;;  %v400_v2 = vand.u32 127, %v399_v0  ;;  %v437_v3 = vshrl.u32 %v399_v0, 7  ;;  %396 = vst [vmem:[%s1583_s14] sm:$0xff] %v1378_v1  ;;  %v406_v9 = vld [vmem:[%s1569_s28] sm:$0x3]  ;;  %vm1601_vm3 = vcmp.lt.s32.totalorder %v399_v0, 256 }
  0x59   : > { %v407_v10 = vld [vmem:[%s312_s25] sm:$0x3] }
  0x5a   : > { %s1014_s13 = sshll.u32 %s369_s29, 1  ;;  %v1586_v4 = vadd.s32 1, %v400_v2  ;;  %vm403_vm0 = vcmp.eq.s32.totalorder %v400_v2, 127  ;;  %v438_v5 = vsub.s32 0, %v437_v3  ;;  %v442_v6 = vsub.s32 1, %v437_v3 }
  0x5b   : > { %s375_s10 = scalar_lea.vmem %s1794_s2, %s1014_s13  ;;  %s383_s12 = scalar_lea.vmem %s1795_s3, %s1014_s13  ;;  %v1594_v7 = vsel %vm403_vm0, 1.0, %v1378_v1 }
  0x5c   : > { %s391_s15 = scalar_lea.vmem %s1796_s4, %s1014_s13  ;;  %vm402_vm1 = vcmp.eq.s32.totalorder %v1586_v4, 128  ;;  %v408_v14 = vld [vmem:[%s375_s10] sm:$0x3] }
  0x5d   : > { %v410_v8 = vld [vmem:[%s391_s15] sm:$0x3] }
  0x5e   : > { %v439_v12 = vrot.slane %v410_v8, %v438_v5  ;;  %v443_v13 = vrot.slane %v410_v8, %v442_v6  ;;  %v409_v15 = vld [vmem:[%s383_s12] sm:$0x3] }
  0x5f   : > { %v411_v16 = vmul.f32 %v409_v15, %v408_v14  ;;  %v419_v17 = vmul.f32 %v409_v15, %v406_v9  ;;  %v427_v18 = vmul.f32 %v409_v15, %v407_v10 }
  0x60   : > { %v445_v19 = vsel %vm444_vm2, %v439_v12, 2147483648  ;;  %v446_v20 = vsel %vm444_vm2, %v443_v13, 2147483648 }
  0x61   : > { %vm447_vm4 = vcmp.gt.s32.totalorder %v445_v19, %v446_v20  ;;  %v412_v21 = vmul.f32 %v411_v16, %v406_v9  ;;  %421 = vst.msk [vmem:[#allocation2 + $0x1] ss:$8 sm:$0x3] %vm1601_vm3, %v419_v17  ;;  %v423_v22 = vmul.f32 %v411_v16, %v407_v10  ;;  %429 = vst.msk [vmem:[#allocation2 + $0x3] ss:$8 sm:$0x3] %vm1601_vm3, %v427_v18 }
  0x62   : > { %432 = vst.msk [vmem:[#allocation2 + $0x4] ss:$8 sm:$0x3] %vm1601_vm3, %v411_v16  ;;  %v448_v23 = vsel %vm447_vm4, %v445_v19, %v446_v20 }
  0x63   : > { %v450_v24 = vshra.s32 %v448_v23, 16  ;;  %417 = vst.msk [vmem:[#allocation2] ss:$8 sm:$0x3] %vm1601_vm3, %v412_v21  ;;  %v449_v28 = vand.u32 65535, %v448_v23 }
  0x64   : > { %425 = vst.msk [vmem:[#allocation2 + $0x2] ss:$8 sm:$0x3] %vm1601_vm3, %v423_v22 }
  0x65   : > { %v452_v25 = vcvt.s32.f32 %v450_v24  ;;  %v451_v29 = vcvt.s32.f32 %v449_v28 }
  0x67   : > { %453 = vmax.xlane.f32.xlu0 %v452_v25 }
  0x6b   : > { %v1615_v26 = vld [vmem:[#allocation2] sm:$0xff]  ;;  %v1617_v27 = vld [vmem:[#allocation2 + $0x8] sm:$0xff] }
  0xf4   : > { %v454_v30 = vpop.xlane.xlu0 %453 }
  0xf5   : > { %vm455_vm5 = vcmp.eq.f32.partialorder %v452_v25, %v454_v30  ;;  %v460_v32 = vcvt.f32.s32 %v454_v30 }
  0xf6   : > { %v456_v31 = vsel %vm455_vm5, %v451_v29, -inf }
  0xf7   : > { %457 = vmax.xlane.f32.xlu0 %v456_v31  ;;  %v461_v34 = vshll.u32 %v460_v32, 16 }
 0x184   : > { %v458_v33 = vpop.xlane.xlu0 %457 }
 0x185   : > { %v459_v35 = vcvt.f32.s32 %v458_v33 }
 0x187   : > { %v462_v36 = vadd.s32 %v461_v34, %v459_v35 }
 0x189   : > { %v463_v37 = vrot.slane %v462_v36, 4 }
 0x18b   : > { %vm464_vm6 = vcmp.gt.s32.totalorder %v462_v36, %v463_v37 }
 0x18c   : > { %v465_v38 = vsel %vm464_vm6, %v462_v36, %v463_v37 }
 0x18d   : > { %v466_v39 = vrot.slane %v465_v38, 2 }
 0x18f   : > { %vm467_vm7 = vcmp.gt.s32.totalorder %v465_v38, %v466_v39 }
 0x190   : > { %v468_v40 = vsel %vm467_vm7, %v465_v38, %v466_v39 }
 0x191   : > { %v469_v41 = vrot.slane %v468_v40, 1 }
 0x193   : > { %vm470_vm8 = vcmp.gt.s32.totalorder %v468_v40, %v469_v41 }
 0x194   : > { %v471_v42 = vsel %vm470_vm8, %v468_v40, %v469_v41 }
 0x195   : > { %1157 = vpush %v471_v42 }
 0x1c6   : > { %s1619_s28 = spop %1157 }
 0x1c7   : > { %p1018_p5 = scmp.le.s32.totalorder %s1619_s28, 0 }
 0x1c8   : > { %v547_v43 = vrot.slane (!%p1018_p5), %v443_v13, %v438_v5  ;;  %v480_v44 = vrot.slane (!%p1018_p5), %v439_v12, %v438_v5  ;;  %806 = vmatprep.mubr.f32.mxu0 (!%p1018_p5), %v1617_v27  ;;  %v1379_v51 = vmov (!%p1018_p5), 1.0|1.0   ;;  %v741_v17 = vld [vmem:[%s1583_s14] sm:$0xff] (!%p1018_p5) }
 0x1c9   : > { %476 = sbr.rel (%p1018_p5) target bundleno = 858 (0x35a), region = 56 }
 0x1ca   : > { %549 = vbcast.lane.b32.xlu0 (!%p1018_p5), %v547_v43, 256  ;;  %482 = vbcast.lane.b32.xlu1 (!%p1018_p5), %v480_v44, 256 }
 0x1ce   : > { %553 = vbcast.lane.b32.xlu0 (!%p1018_p5), %v547_v43, 264  ;;  %486 = vbcast.lane.b32.xlu1 (!%p1018_p5), %v480_v44, 264 }
 0x1d2   : > { %557 = vbcast.lane.b32.xlu0 %v547_v43, 272  ;;  %561 = vbcast.lane.b32.xlu1 %v547_v43, 280 }
 0x1d6   : > { %490 = vbcast.lane.b32.xlu0 %v480_v44, 272  ;;  %494 = vbcast.lane.b32.xlu1 %v480_v44, 280 }
 0x1da   : > { %565 = vbcast.lane.b32.xlu0 %v547_v43, 288  ;;  %569 = vbcast.lane.b32.xlu1 %v547_v43, 296 }
 0x1de   : > { %498 = vbcast.lane.b32.xlu0 %v480_v44, 288  ;;  %502 = vbcast.lane.b32.xlu1 %v480_v44, 296 }
 0x1e2   : > { %573 = vbcast.lane.b32.xlu0 %v547_v43, 304  ;;  %577 = vbcast.lane.b32.xlu1 %v547_v43, 312 }
 0x1e6   : > { %506 = vbcast.lane.b32.xlu0 %v480_v44, 304  ;;  %510 = vbcast.lane.b32.xlu1 %v480_v44, 312 }
 0x1ea   : > { %581 = vbcast.lane.b32.xlu0 %v547_v43, 320  ;;  %585 = vbcast.lane.b32.xlu1 %v547_v43, 328 }
 0x1ee   : > { %514 = vbcast.lane.b32.xlu0 %v480_v44, 320  ;;  %518 = vbcast.lane.b32.xlu1 %v480_v44, 328 }
 0x1f2   : > { %589 = vbcast.lane.b32.xlu0 %v547_v43, 336  ;;  %593 = vbcast.lane.b32.xlu1 %v547_v43, 344 }
 0x1f6   : > { %522 = vbcast.lane.b32.xlu0 %v480_v44, 336  ;;  %526 = vbcast.lane.b32.xlu1 %v480_v44, 344 }
 0x1fa   : > { %597 = vbcast.lane.b32.xlu0 %v547_v43, 352  ;;  %601 = vbcast.lane.b32.xlu1 %v547_v43, 360 }
 0x1fe   : > { %530 = vbcast.lane.b32.xlu0 %v480_v44, 352  ;;  %534 = vbcast.lane.b32.xlu1 %v480_v44, 360 }
 0x202   : > { %605 = vbcast.lane.b32.xlu0 %v547_v43, 368  ;;  %609 = vbcast.lane.b32.xlu1 %v547_v43, 376 }
 0x206   : > { %538 = vbcast.lane.b32.xlu0 %v480_v44, 368  ;;  %542 = vbcast.lane.b32.xlu1 %v480_v44, 376 }
 0x23c   : > { %v550_v45 = vpop.permute.xlu0 %549  ;;  %v483_v46 = vpop.permute.xlu1 %482 }
 0x23d   : > { %vm627_vm9 = vcmp.eq.s32.totalorder %v550_v45, %v1586_v4  ;;  %vm611_vm10 = vcmp.eq.s32.totalorder %v483_v46, %v1586_v4 }
 0x23e   : > { %vm661_vm11 = vmor %vm627_vm9, %vm402_vm1 }
 0x23f   : > { %vm645_vm12 = vmor %vm611_vm10, %vm402_vm1 }
 0x240   : > { %v554_v47 = vpop.permute.xlu0 %553  ;;  %v487_v48 = vpop.permute.xlu1 %486 }
 0x241   : > { %vm628_vm13 = vcmp.eq.s32.totalorder %v554_v47, %v1586_v4  ;;  %vm612_vm14 = vcmp.eq.s32.totalorder %v487_v48, %v1586_v4 }
 0x242   : > { %vm662_vm15 = vmor %vm628_vm13, %vm402_vm1 }
 0x243   : > { %vm646_vm0 = vmor %vm612_vm14, %vm402_vm1 }
 0x244   : > { %vm1125_vm2 = vmpackc.low %vm662_vm15, %vm661_vm11  ;;  %v558_v49 = vpop.permute.xlu0 %557  ;;  %v562_v50 = vpop.permute.xlu1 %561 }
 0x245   : > { %1126 = vmatprep.subr.msk.bf16.mxu0 %vm1125_vm2, %v1379_v51  ;;  %vm629_vm3 = vcmp.eq.s32.totalorder %v558_v49, %v1586_v4  ;;  %vm630_vm4 = vcmp.eq.s32.totalorder %v562_v50, %v1586_v4  ;;  %vm1127_vm5 = vmpackc.low %vm646_vm0, %vm645_vm12 }
 0x246   : > { %vm663_vm6 = vmor %vm629_vm3, %vm402_vm1  ;;  %1128 = vmatpush3.bf16.msk.msra.mxu0 %vm1127_vm5, %v1379_v51 }
 0x247   : > { %vm664_vm7 = vmor %vm630_vm4, %vm402_vm1 }
 0x248   : > { %vm1129_vm8 = vmpackc.low %vm664_vm7, %vm663_vm6  ;;  %v491_v52 = vpop.permute.xlu0 %490  ;;  %v495_v53 = vpop.permute.xlu1 %494 }
 0x249   : > { %vm613_vm9 = vcmp.eq.s32.totalorder %v491_v52, %v1586_v4  ;;  %1130 = vmatprep.subr.msk.bf16.mxu0 %vm1129_vm8, %v1379_v51  ;;  %vm614_vm10 = vcmp.eq.s32.totalorder %v495_v53, %v1586_v4 }
 0x24a   : > { %vm647_vm11 = vmor %vm613_vm9, %vm402_vm1 }
 0x24b   : > { %vm648_vm12 = vmor %vm614_vm10, %vm402_vm1 }
 0x24c   : > { %vm1131_vm13 = vmpackc.low %vm648_vm12, %vm647_vm11  ;;  %v566_v54 = vpop.permute.xlu0 %565  ;;  %v570_v55 = vpop.permute.xlu1 %569 }
 0x24d   : > { %vm631_vm14 = vcmp.eq.s32.totalorder %v566_v54, %v1586_v4  ;;  %1132 = vmatpush3.bf16.msk.msra.mxu0 %vm1131_vm13, %v1379_v51  ;;  %vm632_vm15 = vcmp.eq.s32.totalorder %v570_v55, %v1586_v4 }
 0x24e   : > { %vm665_vm0 = vmor %vm631_vm14, %vm402_vm1 }
 0x24f   : > { %vm666_vm2 = vmor %vm632_vm15, %vm402_vm1 }
 0x250   : > { %vm1133_vm3 = vmpackc.low %vm666_vm2, %vm665_vm0  ;;  %v499_v56 = vpop.permute.xlu0 %498  ;;  %v503_v57 = vpop.permute.xlu1 %502 }
 0x251   : > { %vm615_vm4 = vcmp.eq.s32.totalorder %v499_v56, %v1586_v4  ;;  %1134 = vmatprep.subr.msk.bf16.mxu0 %vm1133_vm3, %v1379_v51  ;;  %vm616_vm5 = vcmp.eq.s32.totalorder %v503_v57, %v1586_v4 }
 0x252   : > { %vm649_vm6 = vmor %vm615_vm4, %vm402_vm1 }
 0x253   : > { %vm650_vm7 = vmor %vm616_vm5, %vm402_vm1 }
 0x254   : > { %vm1135_vm8 = vmpackc.low %vm650_vm7, %vm649_vm6  ;;  %v574_v58 = vpop.permute.xlu0 %573  ;;  %v578_v59 = vpop.permute.xlu1 %577 }
 0x255   : > { %vm633_vm9 = vcmp.eq.s32.totalorder %v574_v58, %v1586_v4  ;;  %1136 = vmatpush3.bf16.msk.msra.mxu0 %vm1135_vm8, %v1379_v51  ;;  %vm634_vm10 = vcmp.eq.s32.totalorder %v578_v59, %v1586_v4 }
 0x256   : > { %vm667_vm11 = vmor %vm633_vm9, %vm402_vm1 }
 0x257   : > { %vm668_vm12 = vmor %vm634_vm10, %vm402_vm1 }
 0x258   : > { %vm1137_vm13 = vmpackc.low %vm668_vm12, %vm667_vm11  ;;  %v507_v60 = vpop.permute.xlu0 %506  ;;  %v511_v61 = vpop.permute.xlu1 %510 }
 0x259   : > { %vm617_vm14 = vcmp.eq.s32.totalorder %v507_v60, %v1586_v4  ;;  %1138 = vmatprep.subr.msk.bf16.mxu0 %vm1137_vm13, %v1379_v51  ;;  %vm618_vm15 = vcmp.eq.s32.totalorder %v511_v61, %v1586_v4 }
 0x25a   : > { %vm651_vm0 = vmor %vm617_vm14, %vm402_vm1 }
 0x25b   : > { %vm652_vm2 = vmor %vm618_vm15, %vm402_vm1 }
 0x25c   : > { %vm1139_vm3 = vmpackc.low %vm652_vm2, %vm651_vm0  ;;  %v582_v62 = vpop.permute.xlu0 %581  ;;  %v586_v63 = vpop.permute.xlu1 %585 }
 0x25d   : > { %vm635_vm4 = vcmp.eq.s32.totalorder %v582_v62, %v1586_v4  ;;  %1140 = vmatpush3.bf16.msk.msra.mxu0 %vm1139_vm3, %v1379_v51  ;;  %vm636_vm5 = vcmp.eq.s32.totalorder %v586_v63, %v1586_v4 }
 0x25e   : > { %vm669_vm6 = vmor %vm635_vm4, %vm402_vm1 }
 0x25f   : > { %vm670_vm7 = vmor %vm636_vm5, %vm402_vm1 }
 0x260   : > { %vm1141_vm8 = vmpackc.low %vm670_vm7, %vm669_vm6  ;;  %v515_v0 = vpop.permute.xlu0 %514  ;;  %v519_v1 = vpop.permute.xlu1 %518 }
 0x261   : > { %vm619_vm9 = vcmp.eq.s32.totalorder %v515_v0, %v1586_v4  ;;  %1142 = vmatprep.subr.msk.bf16.mxu0 %vm1141_vm8, %v1379_v51  ;;  %vm620_vm10 = vcmp.eq.s32.totalorder %v519_v1, %v1586_v4 }
 0x262   : > { %vm653_vm11 = vmor %vm619_vm9, %vm402_vm1 }
 0x263   : > { %vm654_vm12 = vmor %vm620_vm10, %vm402_vm1 }
 0x264   : > { %vm1143_vm13 = vmpackc.low %vm654_vm12, %vm653_vm11  ;;  %v590_v2 = vpop.permute.xlu0 %589  ;;  %v594_v3 = vpop.permute.xlu1 %593 }
 0x265   : > { %vm637_vm14 = vcmp.eq.s32.totalorder %v590_v2, %v1586_v4  ;;  %1144 = vmatpush3.bf16.msk.msra.mxu0 %vm1143_vm13, %v1379_v51  ;;  %vm638_vm15 = vcmp.eq.s32.totalorder %v594_v3, %v1586_v4 }
 0x266   : > { %vm671_vm0 = vmor %vm637_vm14, %vm402_vm1 }
 0x267   : > { %vm672_vm2 = vmor %vm638_vm15, %vm402_vm1 }
 0x268   : > { %vm1145_vm3 = vmpackc.low %vm672_vm2, %vm671_vm0  ;;  %v523_v5 = vpop.permute.xlu0 %522  ;;  %v527_v6 = vpop.permute.xlu1 %526 }
 0x269   : > { %vm621_vm4 = vcmp.eq.s32.totalorder %v523_v5, %v1586_v4  ;;  %1146 = vmatprep.subr.msk.bf16.mxu0 %vm1145_vm3, %v1379_v51  ;;  %vm622_vm5 = vcmp.eq.s32.totalorder %v527_v6, %v1586_v4 }
 0x26a   : > { %vm655_vm6 = vmor %vm621_vm4, %vm402_vm1 }
 0x26b   : > { %vm656_vm7 = vmor %vm622_vm5, %vm402_vm1 }
 0x26c   : > { %vm1147_vm8 = vmpackc.low %vm656_vm7, %vm655_vm6  ;;  %v598_v8 = vpop.permute.xlu0 %597  ;;  %v602_v9 = vpop.permute.xlu1 %601 }
 0x26d   : > { %vm639_vm9 = vcmp.eq.s32.totalorder %v598_v8, %v1586_v4  ;;  %1148 = vmatpush3.bf16.msk.msra.mxu0 %vm1147_vm8, %v1379_v51  ;;  %vm640_vm10 = vcmp.eq.s32.totalorder %v602_v9, %v1586_v4 }
 0x26e   : > { %vm673_vm11 = vmor %vm639_vm9, %vm402_vm1 }
 0x26f   : > { %vm674_vm12 = vmor %vm640_vm10, %vm402_vm1 }
 0x270   : > { %vm1149_vm13 = vmpackc.low %vm674_vm12, %vm673_vm11  ;;  %v531_v10 = vpop.permute.xlu0 %530  ;;  %v535_v11 = vpop.permute.xlu1 %534 }
 0x271   : > { %vm623_vm14 = vcmp.eq.s32.totalorder %v531_v10, %v1586_v4  ;;  %1150 = vmatprep.subr.msk.bf16.mxu0 %vm1149_vm13, %v1379_v51  ;;  %vm624_vm15 = vcmp.eq.s32.totalorder %v535_v11, %v1586_v4 }
 0x272   : > { %vm657_vm0 = vmor %vm623_vm14, %vm402_vm1 }
 0x273   : > { %vm658_vm2 = vmor %vm624_vm15, %vm402_vm1 }
 0x274   : > { %vm1151_vm3 = vmpackc.low %vm658_vm2, %vm657_vm0  ;;  %v606_v12 = vpop.permute.xlu0 %605  ;;  %v610_v13 = vpop.permute.xlu1 %609 }
 0x275   : > { %vm641_vm4 = vcmp.eq.s32.totalorder %v606_v12, %v1586_v4  ;;  %1152 = vmatpush3.bf16.msk.msra.mxu0 %vm1151_vm3, %v1379_v51  ;;  %vm642_vm5 = vcmp.eq.s32.totalorder %v610_v13, %v1586_v4 }
 0x276   : > { %vm675_vm6 = vmor %vm641_vm4, %vm402_vm1 }
 0x277   : > { %vm676_vm7 = vmor %vm642_vm5, %vm402_vm1 }
 0x278   : > { %vm1153_vm8 = vmpackc.low %vm676_vm7, %vm675_vm6  ;;  %v539_v14 = vpop.permute.xlu0 %538  ;;  %v543_v15 = vpop.permute.xlu1 %542 }
 0x279   : > { %vm625_vm9 = vcmp.eq.s32.totalorder %v539_v14, %v1586_v4  ;;  %1154 = vmatprep.subr.msk.bf16.mxu0 %vm1153_vm8, %v1379_v51  ;;  %vm626_vm10 = vcmp.eq.s32.totalorder %v543_v15, %v1586_v4 }
 0x27a   : > { %vm659_vm11 = vmor %vm625_vm9, %vm402_vm1 }
 0x27b   : > { %vm660_vm12 = vmor %vm626_vm10, %vm402_vm1 }
 0x27c   : > { %vm1155_vm13 = vmpackc.low %vm660_vm12, %vm659_vm11 }
 0x27d   : > { %1156 = vmatpush3.bf16.msk.msra.mxu0 %vm1155_vm13, %v1379_v51 }
 0x280   : > { %807 = vmatmul.mubr.f32.vlgmr.msra.gmra.mrb[0].mxu0 %v1615_v26 }
 0x353   : > { %v1122_v16 = vpop.f32.mrb[0].mxu0 }
 0x354   : > { %v1123_v18 = vpop.f32.mrb[1].mxu0 }
 0x355   : > { %v1124_v19 = vadd.f32 %v1123_v18, %v1122_v16 }
 0x357   : > { %v812_v20 = vadd.f32 %v1124_v19, %v741_v17 }
 0x359   : > { %813 = vst [vmem:[%s1583_s14] sm:$0xff] %v812_v20 }
 0x35a PF: > { %p1083_p7 = scmp.gt.s32.totalorder %s1619_s28, 0 }
 0x35b   : > { %v819_v4 = vadd.f32 (!%p1083_p7), %v1617_v27, %v1615_v26 }
 0x35c   : > { %817 = sbr.rel (%p1083_p7) target bundleno = 1008 (0x3f0), region = 60 }
 0x35d   : > { %820 = vadd.xlane.f32.xlu0 (!%p1083_p7), %v819_v4 }
 0x360   : > { %v818_v21 = vld [vmem:[%s1583_s14] sm:$0xff] (!%p1083_p7) }
 0x3ea   : > { %v821_v22 = vpop.xlane.xlu0 %820 }
 0x3eb   : > { %v822_v23 = vmul.f32 %v1594_v7, %v821_v22 }
 0x3ed   : > { %v823_v24 = vadd.f32 %v822_v23, %v818_v21 }
 0x3ef   : > { %824 = vst [vmem:[%s1583_s14] sm:$0xff] %v823_v24 }
 0x3f0 PF: > { %s1085_s25 = sshll.u32 %s1366_s21, 7  ;;  %s839_s9 = sshll.u32 %s1583_s14, 4  ;;  %s840_s9 = int_to_ptr.vmem [resolvable:$true] %s839_s9 }
 0x3f1   : > { %s1748_s30 = scalar_lea.hbm %s1797_s5, %s1085_s25  ;;  %s826_s10 = scalar_lea.sflag [#allocation5], %s1565_s16 }
 0x3f2   : > { %s1288_s27 = scalar_lea.vmem %s840_s9, 128  ;;  %p1812_p10 = scmp.ne.s32.totalorder %s1802_s6, 0 }
 0x3f3   : > { %p1289_p4 = scmp.ne.s32.totalorder %s840_s9, %s1288_s27  ;;  %s1380_s24 = smov [#allocation8]  }
 0x3f4   : > { %s1292_s12 = sshll.u32 %s1380_s24, 4  ;;  %s1293_s12 = int_to_ptr.vmem [resolvable:$false] %s1292_s12 }
 0x3f5   : > { %p1290_p12 = pnand %p1289_p4, %p1812_p10  ;;  %s1294_s11 = scalar_lea.vmem %s1293_s12, 256 }
 0x3f6   : > { %p1295_p2 = scmp.lt.s32.totalorder %s840_s9, %s1293_s12  ;;  %p1296_p9 = scmp.lt.s32.totalorder %s1294_s11, %s1288_s27 }
 0x3f7   : > { %p1291_p1 = pneg %p1290_p12 }
 0x3f8   : > { %p1297_p11 = por %p1296_p9, %p1295_p2 }
 0x3fa   : > { %p1298_p3 = pnand %p1297_p11, %p1291_p1 }
 0x3fc   : > { %1301 = shalt.err (!%p1298_p3)
}
 0x3fd   : > { %s1302_s21 = scalar_lea.hbm %s1748_s30, 128  ;;  %s1306_s17 = scalar_lea.hbm %s1797_s5, 256 }
 0x3fe   : > { %p1303_p6 = scmp.ne.s32.totalorder %s1748_s30, %s1302_s21  ;;  %p1307_p0 = scmp.lt.u32.totalorder %s1748_s30, %s1797_s5 }
 0x3ff   : > { %p1308_p5 = scmp.lt.u32.totalorder %s1306_s17, %s1302_s21  ;;  %p1310_p4 = scmp.lt.u32.totalorder %s1302_s21, %s1748_s30 }
 0x400   : > { %p1304_p13 = pnand %p1303_p6, %p1812_p10 }
 0x401   : > { %p1309_p7 = por %p1308_p5, %p1307_p0 }
 0x402   : > { %p1305_p8 = pneg %p1304_p13 }
 0x403   : > { %p1311_p12 = por %p1310_p4, %p1309_p7 }
 0x405   : > { %p1312_p1 = pnand %p1311_p12, %p1305_p8 }
 0x407   : > { %1315 = shalt.err (!%p1312_p1)
}
 0x408   : > { %1163 = dma.vmem_to_hbm [thread:$0]  (%p1812_p10), %s840_s9, 128, %s1748_s30, %s826_s10  }
 0x409 PF: > { %s851_s25 = sand.u32 1, %s1354_s18   ;;  %p1813_p2 = scmp.ne.s32.totalorder %s1803_s8, 0 }
 0x40a   : > { %p1814_p9 = scmp.ge.s32.totalorder %s1374_s23, 2  ;;  %s852_s29 = scalar_lea.sflag [#allocation5], %s851_s25 }
 0x40c   : > { %p1173_p11 = pnand %p1814_p9, %p1813_p2 }
 0x40e   : > { %1349 = dma.done.wait (!%p1173_p11), %s852_s29, 128  }
 0x40f   : > { %1351 = vsyncadd (!%p1173_p11), %s852_s29, 4294967168  ;;  %s24_s23 = sadd.s32 1, %s1374_s23   ;;  %s1815_s18 = smov %s1358_s19 }
 0x410   : > { %p21_p3 = scmp.ge.s32.totalorder %s24_s23, 4   ;;  %s1816_s19 = smov %s1362_s20 }
 0x411   : > { %s1817_s20 = smov %s1467_s7  ;;  %s1818_s21 = smov %s1370_s22 }
 0x412   : > { %s1819_s22 = smov %s1821_s26  ;;  %23 = sbr.rel (!%p21_p3) target bundleno = 8 (0x8), region = 123 }
 0x419   :  { %857 = vsyncpa [#allocation4], 1 }
 0x41a   :  { %859 = vsyncpa [#allocation4 + $0x1], 1 }
 0x41b   :  { %860 = vsyncpa [#allocation7], 1 }
 0x41c   :  { %862 = vsyncpa [#allocation7 + $0x1], 1 }
 0x41d   :  { %863 = vsyncpa [#allocation5], 1 }
 0x41e   :  { %865 = vsyncpa [#allocation5 + $0x1], 1 }

</bundles_post_ra>
